<compile_context>
chip_gen: v5e
topology: v5e:2x2
jax: 0.10.0
libtpu: 0.0.40
codegen_flags: <defaults>
</compile_context>

<pallas_src>
import functools

import jax
import jax.numpy as jnp
from jax.experimental import pallas as pl
from jax.experimental.pallas import tpu as pltpu

_LANES = 128
_SUBLANES = 8


def _tversky_kernel(pred_ref, tgt_ref, tp_ref, sp_ref, st_ref, *acc_refs,
                    rows_total, block_rows, multi_chunk):
    """Grid = (batch_block, chunk).

    pred_ref / tgt_ref : (TB, block_rows, 128) input tile
    tp/sp/st_ref       : (TB, 1, 128) lane-wise sums of p*t, p, t per sample
    acc_refs           : () in single-chunk mode, else 3 x (8, 128) f32
    """
    if not multi_chunk:
        # One chunk per sample: reduce straight into the lane-dense outputs.
        p = pred_ref[...].astype(jnp.float32)          # (TB, rows, 128)
        t = tgt_ref[...].astype(jnp.float32)
        tp_ref[...] = jnp.sum(p * t, axis=1, keepdims=True)
        sp_ref[...] = jnp.sum(p, axis=1, keepdims=True)
        st_ref[...] = jnp.sum(t, axis=1, keepdims=True)
        return

    # Chunked reduction: TB == 1, block_rows % 8 == 0.
    tp_acc, sp_acc, st_acc = acc_refs                  # each (8, 128) f32
    c = pl.program_id(1)
    last = pl.num_programs(1) - 1

    @pl.when(c == 0)
    def _():
        tp_acc[...] = jnp.zeros_like(tp_acc)
        sp_acc[...] = jnp.zeros_like(sp_acc)
        st_acc[...] = jnp.zeros_like(st_acc)

    p = pred_ref[0].astype(jnp.float32)                # (block_rows, 128)
    t = tgt_ref[0].astype(jnp.float32)
    groups = block_rows // _SUBLANES

    def accumulate(pv, tv):
        # (block_rows, 128) -> (groups, 8, 128) is a tile-aligned reshape, so
        # the axis-0 reduce is pure vreg adds (VALU); the 8->1 sublane reduce
        # is deferred to finalize and the 128->1 lane reduce to the wrapper.
        pg = pv.reshape(groups, _SUBLANES, _LANES)
        tg = tv.reshape(groups, _SUBLANES, _LANES)
        tp_acc[...] += jnp.sum(pg * tg, axis=0)
        sp_acc[...] += jnp.sum(pg, axis=0)
        st_acc[...] += jnp.sum(tg, axis=0)

    if rows_total % block_rows != 0:
        # Only the final chunk contains out-of-bounds (garbage-padded) rows;
        # gate the iota/compare/select so full chunks stay mask-free.
        @pl.when(c == last)
        def _():
            row = jax.lax.broadcasted_iota(jnp.int32, p.shape, 0) + c * block_rows
            valid = row < rows_total
            accumulate(jnp.where(valid, p, 0.0), jnp.where(valid, t, 0.0))

        @pl.when(c != last)
        def _():
            accumulate(p, t)
    else:
        accumulate(p, t)

    @pl.when(c == last)
    def _():
        tp_ref[0] = jnp.sum(tp_acc[...], axis=0, keepdims=True)
        sp_ref[0] = jnp.sum(sp_acc[...], axis=0, keepdims=True)
        st_ref[0] = jnp.sum(st_acc[...], axis=0, keepdims=True)


def tversky_loss(pred, target, alpha=0.3, beta=0.7, smooth=1.0,
                 vmem_input_budget_bytes=16 * 1024 * 1024):
    """Pallas TPU implementation of TverskyLoss.forward (returns a scalar)."""
    assert pred.shape == target.shape
    B = pred.shape[0]
    pred_flat = pred.reshape(B, -1)
    tgt_flat = target.reshape(B, -1)
    N = pred_flat.shape[1]

    pad = (-N) % _LANES
    if pad:
        # TODO(synk): C*H*W % 128 != 0 still pays one extra HBM copy of both
        # inputs; typical segmentation shapes never take this branch.
        pred_flat = jnp.pad(pred_flat, ((0, 0), (0, pad)))
        tgt_flat = jnp.pad(tgt_flat, ((0, 0), (0, pad)))
    n_rows = (N + pad) // _LANES

    itemsize = max(pred_flat.dtype.itemsize, tgt_flat.dtype.itemsize)
    # Per-element steady-state VMEM: 2 inputs x 2 pipeline buffers at the input
    # dtype PLUS ~4 block-sized f32 temporaries the body materializes (f32
    # casts of p and t, p*t, slack).  Keeps the real footprint well under the
    # 32 MiB scoped limit, which matters most on v7x (64 MiB physical VMEM).
    bytes_per_row = _LANES * (2 * 2 * itemsize + 4 * 4)
    max_rows = max(_SUBLANES,
                   (vmem_input_budget_bytes // bytes_per_row)
                   // _SUBLANES * _SUBLANES)

    if n_rows <= max_rows:
        # Small per-sample data: tile over the batch so each grid step issues
        # one large contiguous DMA instead of B tiny ones.
        split = 1
        tb = max(1, min(B, vmem_input_budget_bytes
                        // max(1, n_rows * bytes_per_row)))
        rows_v = n_rows
        block_rows = n_rows
    else:
        # Large per-sample data: chunk the per-sample reduction.  For odd B
        # (incl. B == 1) split each sample into two virtual samples (pure
        # reshape) so the "parallel" batch axis balances both v7x TensorCores;
        # halves are recombined in the wrapper before the Tversky nonlinearity.
        tb = 1
        split = 2 if (B % 2 == 1 and n_rows % 2 == 0) else 1
        rows_v = n_rows // split
        block_rows = rows_v if rows_v <= max_rows else max_rows

    b_v = B * split
    num_chunks = pl.cdiv(rows_v, block_rows)
    multi_chunk = num_chunks > 1

    # Layout-preserving reshape: (B, N_pad) -> (b_v, rows_v, 128).
    pred3 = pred_flat.reshape(b_v, rows_v, _LANES)
    tgt3 = tgt_flat.reshape(b_v, rows_v, _LANES)

    kernel = functools.partial(
        _tversky_kernel, rows_total=rows_v, block_rows=block_rows,
        multi_chunk=multi_chunk)

    part_shape = jax.ShapeDtypeStruct((b_v, 1, _LANES), jnp.float32)
    part_spec = pl.BlockSpec((tb, 1, _LANES), lambda b, c: (b, 0, 0))
    in_spec = pl.BlockSpec((tb, block_rows, _LANES), lambda b, c: (b, c, 0))

    scratch = []
    if multi_chunk:
        scratch = [pltpu.VMEM((_SUBLANES, _LANES), jnp.float32)] * 3

    total = B * (N + pad)
    cost = pl.CostEstimate(
        flops=4 * total, transcendentals=0,
        bytes_accessed=2 * total * itemsize + 3 * b_v * _LANES * 4)

    tp_l, sp_l, st_l = pl.pallas_call(
        kernel,
        out_shape=(part_shape, part_shape, part_shape),
        grid_spec=pltpu.PrefetchScalarGridSpec(
            num_scalar_prefetch=0,
            grid=(pl.cdiv(b_v, tb), num_chunks),
            in_specs=[in_spec, in_spec],
            out_specs=[part_spec, part_spec, part_spec],
            scratch_shapes=scratch,
        ),
        compiler_params=pltpu.CompilerParams(
            dimension_semantics=("parallel", "arbitrary"),
            vmem_limit_bytes=32 * 1024 * 1024,
        ),
        cost_estimate=cost,
    )(pred3, tgt3)

    # Tiny epilogue in plain XLA: cross-lane reduce, recombine the virtual
    # split, then the Tversky nonlinearity and the batch mean.
    tp = jnp.sum(tp_l, axis=(1, 2))
    sp = jnp.sum(sp_l, axis=(1, 2))
    st = jnp.sum(st_l, axis=(1, 2))
    if split > 1:
        tp = tp.reshape(B, split).sum(axis=1)
        sp = sp.reshape(B, split).sum(axis=1)
        st = st.reshape(B, split).sum(axis=1)
    # fp = sp - tp ; fn = st - tp
    denom = (1.0 - alpha - beta) * tp + alpha * sp + beta * st + smooth
    return jnp.mean(1.0 - (tp + smooth) / denom)


def _reference(pred, target, alpha=0.3, beta=0.7, smooth=1.0):
    B = pred.shape[0]
    p = pred.reshape(B, -1).astype(jnp.float32)
    t = target.reshape(B, -1).astype(jnp.float32)
    tp = jnp.sum(p * t, axis=1)
    fp = jnp.sum((1.0 - t) * p, axis=1)
    fn = jnp.sum(t * (1.0 - p), axis=1)
    tversky = (tp + smooth) / (tp + alpha * fp + beta * fn + smooth)
    return jnp.mean(1.0 - tversky)


if __name__ == "__main__":
    key = jax.random.PRNGKey(0)

    # Case 1: typical small NCHW shape -> batch-tiled single-chunk path.
    k1, k2, key = jax.random.split(key, 3)
    pred = jax.nn.sigmoid(jax.random.normal(k1, (2, 4, 16, 16), dtype=jnp.float32))
    target = (jax.random.uniform(k2, (2, 4, 16, 16)) > 0.5).astype(jnp.float32)
    loss = tversky_loss(pred, target)
    jax.block_until_ready(loss)
    assert jnp.allclose(loss, _reference(pred, target), atol=1e-5, rtol=1e-5)

    # Case 2: odd batch + tiny VMEM budget -> chunked reduction with a masked
    # partial tail chunk and the 2-way virtual-batch split (v7x balance).
    k1, k2, key = jax.random.split(key, 3)
    pred = jax.nn.sigmoid(jax.random.normal(k1, (3, 1, 40, 128), dtype=jnp.float32))
    target = (jax.random.uniform(k2, (3, 1, 40, 128)) > 0.5).astype(jnp.float32)
    loss = tversky_loss(pred, target, vmem_input_budget_bytes=64 * 1024)
    jax.block_until_ready(loss)
    assert jnp.allclose(loss, _reference(pred, target), atol=1e-5, rtol=1e-5)

    # Case 3: C*H*W not a multiple of 128 -> padded-lane fallback path.
    k1, k2, key = jax.random.split(key, 3)
    pred = jax.nn.sigmoid(jax.random.normal(k1, (3, 1, 10, 10), dtype=jnp.float32))
    target = (jax.random.uniform(k2, (3, 1, 10, 10)) > 0.5).astype(jnp.float32)
    loss = tversky_loss(pred, target)
    jax.block_until_ready(loss)
    assert jnp.allclose(loss, _reference(pred, target), atol=1e-5, rtol=1e-5)

    print("KERNEL_OK")
</pallas_src>

<mosaic_0001>
module attributes {stable_mosaic.version = 11 : i64} {
  func.func @_tversky_kernel(%arg0: i32, %arg1: i32, %arg2: memref<2x8x128xf32, #tpu.memory_space<vmem>>, %arg3: memref<2x8x128xf32, #tpu.memory_space<vmem>>, %arg4: memref<2x1x128xf32, #tpu.memory_space<vmem>>, %arg5: memref<2x1x128xf32, #tpu.memory_space<vmem>>, %arg6: memref<2x1x128xf32, #tpu.memory_space<vmem>>) attributes {dimension_semantics = [#tpu.dimension_semantics<parallel>, #tpu.dimension_semantics<arbitrary>], iteration_bounds = array<i64: 1, 1>, scalar_prefetch = 0 : i64, scratch_operands = 0 : i64, tpu.core_type = #tpu.core_type<tc>, window_params = [{transform_indices = @transform_0, window_bounds = array<i64: 2, 8, 128>}, {transform_indices = @transform_1, window_bounds = array<i64: 2, 8, 128>}, {transform_indices = @transform_2, window_bounds = array<i64: 2, 1, 128>}, {transform_indices = @transform_3, window_bounds = array<i64: 2, 1, 128>}, {transform_indices = @transform_4, window_bounds = array<i64: 2, 1, 128>}]} {
    %c0 = arith.constant 0 : index
    %c0_0 = arith.constant 0 : index
    %c0_1 = arith.constant 0 : index
    %0 = vector.load %arg2[%c0, %c0_0, %c0_1] : memref<2x8x128xf32, #tpu.memory_space<vmem>>, vector<2x8x128xf32>
    %c0_2 = arith.constant 0 : index
    %c0_3 = arith.constant 0 : index
    %c0_4 = arith.constant 0 : index
    %1 = vector.load %arg3[%c0_2, %c0_3, %c0_4] : memref<2x8x128xf32, #tpu.memory_space<vmem>>, vector<2x8x128xf32>
    %2 = arith.mulf %0, %1 : vector<2x8x128xf32>
    %cst = arith.constant dense<0.000000e+00> : vector<2x128xf32>
    %3 = vector.multi_reduction <add>, %2, %cst [1] : vector<2x8x128xf32> to vector<2x128xf32>
    %4 = vector.shape_cast %3 : vector<2x128xf32> to vector<2x1x128xf32>
    %c0_5 = arith.constant 0 : index
    %c0_6 = arith.constant 0 : index
    %c0_7 = arith.constant 0 : index
    %5 = vector.load %arg4[%c0_5, %c0_6, %c0_7] : memref<2x1x128xf32, #tpu.memory_space<vmem>>, vector<2x1x128xf32>
    tpu.vector_store %arg4[%c0_5, %c0_6, %c0_7], %4 {strides = array<i32>} : memref<2x1x128xf32, #tpu.memory_space<vmem>>, vector<2x1x128xf32>,
    %cst_8 = arith.constant dense<0.000000e+00> : vector<2x128xf32>
    %6 = vector.multi_reduction <add>, %0, %cst_8 [1] : vector<2x8x128xf32> to vector<2x128xf32>
    %7 = vector.shape_cast %6 : vector<2x128xf32> to vector<2x1x128xf32>
    %c0_9 = arith.constant 0 : index
    %c0_10 = arith.constant 0 : index
    %c0_11 = arith.constant 0 : index
    %8 = vector.load %arg5[%c0_9, %c0_10, %c0_11] : memref<2x1x128xf32, #tpu.memory_space<vmem>>, vector<2x1x128xf32>
    tpu.vector_store %arg5[%c0_9, %c0_10, %c0_11], %7 {strides = array<i32>} : memref<2x1x128xf32, #tpu.memory_space<vmem>>, vector<2x1x128xf32>,
    %cst_12 = arith.constant dense<0.000000e+00> : vector<2x128xf32>
    %9 = vector.multi_reduction <add>, %1, %cst_12 [1] : vector<2x8x128xf32> to vector<2x128xf32>
    %10 = vector.shape_cast %9 : vector<2x128xf32> to vector<2x1x128xf32>
    %c0_13 = arith.constant 0 : index
    %c0_14 = arith.constant 0 : index
    %c0_15 = arith.constant 0 : index
    %11 = vector.load %arg6[%c0_13, %c0_14, %c0_15] : memref<2x1x128xf32, #tpu.memory_space<vmem>>, vector<2x1x128xf32>
    tpu.vector_store %arg6[%c0_13, %c0_14, %c0_15], %10 {strides = array<i32>} : memref<2x1x128xf32, #tpu.memory_space<vmem>>, vector<2x1x128xf32>,
    return
  }
  func.func @transform_0(%arg0: i32, %arg1: i32) -> (i32, i32, i32) {
    %c0_i32 = arith.constant 0 : i32
    %c0_i32_0 = arith.constant 0 : i32
    return %arg0, %arg1, %c0_i32 : i32, i32, i32
  }
  func.func @transform_1(%arg0: i32, %arg1: i32) -> (i32, i32, i32) {
    %c0_i32 = arith.constant 0 : i32
    %c0_i32_0 = arith.constant 0 : i32
    return %arg0, %arg1, %c0_i32 : i32, i32, i32
  }
  func.func @transform_2(%arg0: i32, %arg1: i32) -> (i32, i32, i32) {
    %c0_i32 = arith.constant 0 : i32
    %c0_i32_0 = arith.constant 0 : i32
    %c0_i32_1 = arith.constant 0 : i32
    return %arg0, %c0_i32, %c0_i32_0 : i32, i32, i32
  }
  func.func @transform_3(%arg0: i32, %arg1: i32) -> (i32, i32, i32) {
    %c0_i32 = arith.constant 0 : i32
    %c0_i32_0 = arith.constant 0 : i32
    %c0_i32_1 = arith.constant 0 : i32
    return %arg0, %c0_i32, %c0_i32_0 : i32, i32, i32
  }
  func.func @transform_4(%arg0: i32, %arg1: i32) -> (i32, i32, i32) {
    %c0_i32 = arith.constant 0 : i32
    %c0_i32_0 = arith.constant 0 : i32
    %c0_i32_1 = arith.constant 0 : i32
    return %arg0, %c0_i32, %c0_i32_0 : i32, i32, i32
  }
}

</mosaic_0001>

<bundles_post_ra>
// kernel: tpu_custom_call.1
= control target key start
LH: loop header
LB: loop body
LE: loop exit
PB: predicated region body
PF: predicated region fallthrough
CT: control target
= control target key end

     0   :  { %10 = vsyncpa [#allocation3], 0  ;;  %s340_s0 = inlined_call_operand.hbm [shape: f32[2,8,128], index: 0, kind: input, shape index: {}]   ;;  %s341_s1 = inlined_call_operand.hbm [shape: f32[2,8,128], index: 1, kind: input, shape index: {}]   ;;  %s342_s2 = inlined_call_operand.hbm [shape: f32[2,1,128], index: 2, kind: output, shape index: {0}]   ;;  %s343_s3 = inlined_call_operand.hbm [shape: f32[2,1,128], index: 3, kind: output, shape index: {1}]   ;;  %s344_s4 = inlined_call_operand.hbm [shape: f32[2,1,128], index: 4, kind: output, shape index: {2}]  }
   0x1   :  { %11 = vsyncpa [#allocation6], 0 }
   0x2   :  { %12 = vsyncpa [#allocation4], 0 }
   0x3   :  { %13 = vsyncpa [#allocation9], 0  ;;  %s18_s17 = sshll.u32 %s340_s0, 4  ;;  %s288_s18 = smov [#allocation2]   ;;  %s19_s17 = int_to_ptr.hbm [resolvable:$true] %s18_s17 }
   0x4   :  { %s20_s19 = sshll.u32 %s288_s18, 4  ;;  %s31_s22 = sshll.u32 %s341_s1, 4  ;;  %s21_s19 = int_to_ptr.vmem [resolvable:$true] %s20_s19  ;;  %s32_s22 = int_to_ptr.hbm [resolvable:$true] %s31_s22 }
   0x5   :  { %s289_s23 = smov 128   ;;  %s290_s24 = smov 8  }
   0x6   :  { %26 = dma.hbm_to_vmem [thread:$0]  %s19_s17, 256, %s21_s19, [#allocation3], %s289_s23, %s289_s23, %s290_s24  }
   0x7   :  { %s291_s25 = smov [#allocation5]  }
   0x8   :  { %s33_s26 = sshll.u32 %s291_s25, 4  ;;  %s34_s26 = int_to_ptr.vmem [resolvable:$true] %s33_s26 }
   0x9   :  { %39 = dma.hbm_to_vmem [thread:$0]  %s32_s22, 256, %s34_s26, [#allocation6], %s289_s23, %s289_s23, %s290_s24  }
   0xa   :  { %280 = dma.done.wait [#allocation3], 256  }
   0xb   :  { %281 = vsyncadd [#allocation3], 4294967040 }
   0xc   :  { %282 = dma.done.wait [#allocation6], 256  }
   0xd   :  { %283 = vsyncadd [#allocation6], 4294967040  ;;  %v48_v0 = vld [vmem:[#allocation2] sm:$0xff]  ;;  %v49_v1 = vld [vmem:[#allocation2 + $0x8] sm:$0xff]  ;;  %s292_s0 = smov [#allocation8]   ;;  %s115_s29 = sshll.u32 %s343_s3, 4  ;;  %s116_s29 = int_to_ptr.hbm [resolvable:$true] %s115_s29 }
   0xe   :  { %v50_v2 = vld [vmem:[#allocation5] sm:$0xff]  ;;  %v68_v3 = vrot.slane %v48_v0, 4  ;;  %v74_v4 = vrot.slane %v49_v1, 4  ;;  %v51_v6 = vld [vmem:[#allocation5 + $0x8] sm:$0xff]  ;;  %s328_s1 = sshll.u32 %s292_s0, 4  ;;  %s293_s30 = smov [#allocation7]   ;;  %s114_s1 = int_to_ptr.vmem [resolvable:$true] %s328_s1 }
   0xf   :  { %v52_v5 = vmul.f32 %v50_v2, %v48_v0  ;;  %v82_v7 = vrot.slane %v50_v2, 4  ;;  %v53_v8 = vmul.f32 %v51_v6, %v49_v1  ;;  %v88_v9 = vrot.slane %v51_v6, 4  ;;  %s100_s5 = sshll.u32 %s293_s30, 4  ;;  %s102_s8 = sshll.u32 %s342_s2, 4  ;;  %s101_s5 = int_to_ptr.vmem [resolvable:$true] %s100_s5  ;;  %s103_s8 = int_to_ptr.hbm [resolvable:$true] %s102_s8 }
  0x10   :  { %v69_v10 = vadd.f32 %v68_v3, %v48_v0  ;;  %v75_v11 = vadd.f32 %v74_v4, %v49_v1  ;;  %s294_s9 = smov [#allocation10]   ;;  %s128_s12 = sshll.u32 %s344_s4, 4  ;;  %s129_s12 = int_to_ptr.hbm [resolvable:$true] %s128_s12 }
  0x11   :  { %v54_v12 = vrot.slane %v52_v5, 4  ;;  %v83_v13 = vadd.f32 %v82_v7, %v50_v2  ;;  %v60_v14 = vrot.slane %v53_v8, 4  ;;  %v89_v15 = vadd.f32 %v88_v9, %v51_v6  ;;  %s126_s10 = sshll.u32 %s294_s9, 4  ;;  %s295_s13 = smov 16   ;;  %s127_s10 = int_to_ptr.vmem [resolvable:$true] %s126_s10 }
  0x12   :  { %v70_v16 = vrot.slane %v69_v10, 2  ;;  %v76_v17 = vrot.slane %v75_v11, 2  ;;  %s296_s2 = smov 1  }
  0x13   :  { %v55_v18 = vadd.f32 %v54_v12, %v52_v5  ;;  %v84_v19 = vrot.slane %v83_v13, 2  ;;  %v61_v20 = vadd.f32 %v60_v14, %v53_v8  ;;  %v90_v21 = vrot.slane %v89_v15, 2 }
  0x14   :  { %v71_v22 = vadd.f32 %v70_v16, %v69_v10  ;;  %v77_v23 = vadd.f32 %v76_v17, %v75_v11 }
  0x15   :  { %v56_v24 = vrot.slane %v55_v18, 2  ;;  %v85_v25 = vadd.f32 %v84_v19, %v83_v13  ;;  %v62_v26 = vrot.slane %v61_v20, 2  ;;  %v91_v27 = vadd.f32 %v90_v21, %v89_v15 }
  0x16   :  { %v72_v28 = vrot.slane %v71_v22, 1  ;;  %v78_v29 = vrot.slane %v77_v23, 1 }
  0x17   :  { %v57_v30 = vadd.f32 %v56_v24, %v55_v18  ;;  %v86_v31 = vrot.slane %v85_v25, 1  ;;  %v63_v32 = vadd.f32 %v62_v26, %v61_v20  ;;  %v92_v33 = vrot.slane %v91_v27, 1 }
  0x18   :  { %v73_v34 = vadd.f32 %v72_v28, %v71_v22  ;;  %v79_v35 = vadd.f32 %v78_v29, %v77_v23 }
  0x19   :  { %v58_v36 = vrot.slane %v57_v30, 1  ;;  %v64_v37 = vrot.slane %v63_v32, 1  ;;  %v87_v39 = vadd.f32 %v86_v31, %v85_v25  ;;  %v93_v41 = vadd.f32 %v92_v33, %v91_v27 }
  0x1a   :  { %80 = vst [vmem:[#allocation8] sm:$0x1] %v73_v34 }
  0x1b   :  { %v59_v38 = vadd.f32 %v58_v36, %v57_v30  ;;  %81 = vst [vmem:[#allocation8 + $0x1] sm:$0x1] %v79_v35  ;;  %v65_v40 = vadd.f32 %v64_v37, %v63_v32 }
  0x1c   :  { %121 = dma.vmem_to_hbm [thread:$0]  %s114_s1, 32, %s116_s29, [#allocation9], %s295_s13, %s295_s13, %s296_s2   ;;  %94 = vst [vmem:[#allocation10] sm:$0x1] %v87_v39 }
  0x1d   :  { %66 = vst [vmem:[#allocation7] sm:$0x1] %v59_v38 }
  0x1e   :  { %67 = vst [vmem:[#allocation7 + $0x1] sm:$0x1] %v65_v40 }
  0x1f   :  { %108 = dma.vmem_to_hbm [thread:$0]  %s101_s5, 32, %s103_s8, [#allocation4], %s295_s13, %s295_s13, %s296_s2   ;;  %95 = vst [vmem:[#allocation10 + $0x1] sm:$0x1] %v93_v41 }
  0x20   :  { %134 = dma.vmem_to_hbm [thread:$0]  %s127_s10, 32, %s129_s12, [#allocation9], %s295_s13, %s295_s13, %s296_s2  }
  0x21   :  { %284 = dma.done.wait [#allocation4], 32  }
  0x22   :  { %285 = vsyncadd [#allocation4], 4294967264 }
  0x23   :  { %286 = dma.done.wait [#allocation9], 64  }
  0x24   :  { %287 = vsyncadd [#allocation9], 4294967232 }
  0x25   :  { %147 = vsyncpa [#allocation3], 1 }
  0x26   :  { %148 = vsyncpa [#allocation6], 1 }
  0x27   :  { %149 = vsyncpa [#allocation4], 1 }
  0x28   :  { %150 = vsyncpa [#allocation9], 1 }

</bundles_post_ra>
